<compile_context>
chip_gen: v5e
topology: v5e:2x2
jax: 0.10.0
libtpu: 0.0.40
codegen_flags: <defaults>
</compile_context>

<pallas_src>
import functools

import jax
import jax.numpy as jnp
import numpy as np
from jax.experimental import pallas as pl
from jax.experimental.pallas import tpu as pltpu

LANE = 128
RESIDENT_P_BYTES = 8 * 1024 * 1024   # keep P fully VMEM-resident when <= 8 MiB


def _round_up(x, m):
    return ((x + m - 1) // m) * m


def _pick_tiles(n):
    """Row/col tile sizes for A.  Same tiles on every TPU generation."""
    tm_pref, tk_pref = 512, 2048
    tm = n if n <= tm_pref else tm_pref
    tk = n if n <= tk_pref else tk_pref
    # Demo-scale simplification: no ragged-edge handling.
    assert n % tm == 0 and n % tk == 0, "N must divide the chosen tile sizes"
    return tm, tk


def _vmem_limit(need_bytes):
    # Never below the 32 MiB scoped default; capped at v7x's 64 MiB physical.
    return int(min(max(2 * need_bytes + (4 << 20), 32 << 20), 64 << 20))


# ----------------------------------------------------------------------------
# Pallas kernel 0: per-layer prologue  P = X @ W  (bf16 output, computed once)
# ----------------------------------------------------------------------------
def _xw_kernel(x_ref, w_ref, p_ref):
    p_ref[...] = jnp.dot(x_ref[...].astype(jnp.bfloat16), w_ref[...],
                         preferred_element_type=jnp.float32).astype(p_ref.dtype)


def _xw(x, w_bf, tp):
    n, f_in = x.shape
    f_out = w_bf.shape[1]
    return pl.pallas_call(
        _xw_kernel,
        out_shape=jax.ShapeDtypeStruct((n, f_out), jnp.bfloat16),
        grid=(n // tp,),
        in_specs=[
            pl.BlockSpec((tp, f_in), lambda i: (i, 0)),
            pl.BlockSpec((f_in, f_out), lambda i: (0, 0)),
        ],
        out_specs=pl.BlockSpec((tp, f_out), lambda i: (i, 0)),
        compiler_params=pltpu.CompilerParams(
            dimension_semantics=("parallel",)),
        cost_estimate=pl.CostEstimate(
            flops=2 * n * f_in * f_out,
            transcendentals=0,
            bytes_accessed=n * f_in * 4 + f_in * f_out * 2 + n * f_out * 2),
    )(x, w_bf)


# ----------------------------------------------------------------------------
# Pallas kernel 1: one GCN layer, tiled:  out = act(A_hat @ P + b)
# ----------------------------------------------------------------------------
def _gcn_layer_kernel(a_ref, p_ref, b_ref, out_ref, acc_ref,
                      *, relu, tk, resident):
    k = pl.program_id(1)

    @pl.when(k == 0)
    def _():
        acc_ref[...] = jnp.zeros_like(acc_ref)

    if resident:                       # P fully VMEM-resident, slice per k
        start = pl.multiple_of(k * tk, tk)
        p = p_ref[pl.ds(start, tk), :]
    else:                              # P tile streamed keyed on k
        p = p_ref[...]
    acc_ref[...] += jnp.dot(a_ref[...], p, preferred_element_type=jnp.float32)

    @pl.when(k == pl.num_programs(1) - 1)
    def _():
        h = acc_ref[...] + b_ref[...]
        if relu:
            h = jnp.maximum(h, 0.0)
        out_ref[...] = h.astype(out_ref.dtype)    # bf16, lane-dense (padded)


def _gcn_layer(a_bf, p_bf, b, tm, tk, relu, resident):
    n = a_bf.shape[0]
    f_out = p_bf.shape[1]
    kernel = functools.partial(_gcn_layer_kernel, relu=relu, tk=tk,
                               resident=resident)
    if resident:
        p_spec = pl.BlockSpec((n, f_out), lambda i, k: (0, 0))
        p_reads = 1
    else:
        p_spec = pl.BlockSpec((tk, f_out), lambda i, k: (k, 0))
        p_reads = n // tm
    need = (2 * tm * tk * 2                       # A tiles (bf16, 2 buffers)
            + 2 * (n if resident else tk) * f_out * 2
            + 2 * tm * f_out * 2                  # bf16 output block
            + tm * f_out * 4                      # f32 accumulator
            + 2 * f_out * 4)
    return pl.pallas_call(
        kernel,
        out_shape=jax.ShapeDtypeStruct((n, f_out), jnp.bfloat16),
        grid=(n // tm, n // tk),
        in_specs=[
            pl.BlockSpec((tm, tk), lambda i, k: (i, k)),        # A_hat tile
            p_spec,                                             # P = X@W
            pl.BlockSpec((1, f_out), lambda i, k: (0, 0)),      # bias
        ],
        out_specs=pl.BlockSpec((tm, f_out), lambda i, k: (i, 0)),
        scratch_shapes=[pltpu.VMEM((tm, f_out), jnp.float32)],
        compiler_params=pltpu.CompilerParams(
            dimension_semantics=("parallel", "arbitrary"),
            vmem_limit_bytes=_vmem_limit(need)),
        cost_estimate=pl.CostEstimate(
            flops=2 * n * n * f_out,
            transcendentals=0,
            bytes_accessed=(n * n * 2 + p_reads * n * f_out * 2
                            + n * f_out * 2 + f_out * 4)),
    )(a_bf, p_bf, b)


# ----------------------------------------------------------------------------
# Pallas kernel 2: final GCN layer fused with the head
#   act(A_hat @ P + b) -> L2 normalize -> gc3 -> log_softmax -> masked NLL
# ----------------------------------------------------------------------------
def _gcn_final_kernel(a_ref, p_ref, b_ref, w3_ref, b3_ref, mask_ref,
                      onehot_ref, pred_ref, hout_ref, lrow_ref, acc_ref,
                      *, relu, tk, resident, n_class):
    k = pl.program_id(1)

    @pl.when(k == 0)
    def _():
        acc_ref[...] = jnp.zeros_like(acc_ref)

    if resident:
        start = pl.multiple_of(k * tk, tk)
        p = p_ref[pl.ds(start, tk), :]
    else:
        p = p_ref[...]
    acc_ref[...] += jnp.dot(a_ref[...], p, preferred_element_type=jnp.float32)

    @pl.when(k == pl.num_programs(1) - 1)
    def _():
        h = acc_ref[...] + b_ref[...]
        if relu:
            h = jnp.maximum(h, 0.0)
        # F.normalize(h, p=2, dim=1) == h / max(||h||, 1e-12)
        sumsq = jnp.sum(h * h, axis=1, keepdims=True)
        hn = h * jax.lax.rsqrt(jnp.maximum(sumsq, 1e-24))
        hout_ref[...] = hn

        # gc3 (Linear) + log_softmax over the real classes; padded class
        # columns are masked with a large negative so exp(.) == 0.
        logits = jnp.dot(hn.astype(jnp.bfloat16), w3_ref[...],
                         preferred_element_type=jnp.float32) + b3_ref[...]
        col = jax.lax.broadcasted_iota(jnp.int32, logits.shape, 1)
        logits = jnp.where(col < n_class, logits, jnp.float32(-1e30))
        m = jnp.max(logits, axis=1, keepdims=True)
        lse = m + jnp.log(jnp.sum(jnp.exp(logits - m), axis=1, keepdims=True))
        logprob = logits - lse
        pred_ref[...] = logprob                       # lane-dense 128

        # per-row masked NLL (onehot pad columns are 0); final scalar sum and
        # 1/num_train scale happen in the wrapper so the row axis stays
        # megacore-parallel.
        per_row = -jnp.sum(onehot_ref[...] * logprob, axis=1, keepdims=True)
        lrow_ref[...] = per_row * mask_ref[...]


def _gcn_final_layer(a_bf, p_bf, b, w3p, b3p, mask, onehotp, tm, tk, relu,
                     resident, n_class):
    n = a_bf.shape[0]
    hp = p_bf.shape[1]
    cp = w3p.shape[1]
    kernel = functools.partial(_gcn_final_kernel, relu=relu, tk=tk,
                               resident=resident, n_class=n_class)
    if resident:
        p_spec = pl.BlockSpec((n, hp), lambda i, k: (0, 0))
        p_reads = 1
    else:
        p_spec = pl.BlockSpec((tk, hp), lambda i, k: (k, 0))
        p_reads = n // tm
    need = (2 * tm * tk * 2
            + 2 * (n if resident else tk) * hp * 2
            + 2 * hp * cp * 2
            + 2 * tm * (cp + hp + 1 + cp) * 4       # pred/hout/lrow/onehot
            + tm * hp * 4)
    return pl.pallas_call(
        kernel,
        out_shape=(
            jax.ShapeDtypeStruct((n, cp), jnp.float32),   # padded log-probs
            jax.ShapeDtypeStruct((n, hp), jnp.float32),   # padded normalized h
            jax.ShapeDtypeStruct((n, 1), jnp.float32),    # per-row masked NLL
        ),
        grid=(n // tm, n // tk),
        in_specs=[
            pl.BlockSpec((tm, tk), lambda i, k: (i, k)),      # A_hat tile
            p_spec,                                           # P = H@W
            pl.BlockSpec((1, hp), lambda i, k: (0, 0)),       # layer bias
            pl.BlockSpec((hp, cp), lambda i, k: (0, 0)),      # W3 (resident)
            pl.BlockSpec((1, cp), lambda i, k: (0, 0)),       # b3 (resident)
            pl.BlockSpec((tm, 1), lambda i, k: (i, 0)),       # train mask
            pl.BlockSpec((tm, cp), lambda i, k: (i, 0)),      # one-hot labels
        ],
        out_specs=(
            pl.BlockSpec((tm, cp), lambda i, k: (i, 0)),
            pl.BlockSpec((tm, hp), lambda i, k: (i, 0)),
            pl.BlockSpec((tm, 1), lambda i, k: (i, 0)),
        ),
        scratch_shapes=[pltpu.VMEM((tm, hp), jnp.float32)],
        compiler_params=pltpu.CompilerParams(
            dimension_semantics=("parallel", "arbitrary"),
            vmem_limit_bytes=_vmem_limit(need)),
        cost_estimate=pl.CostEstimate(
            flops=2 * n * n * hp + 2 * n * hp * cp,
            transcendentals=n * (cp + 4),
            bytes_accessed=(n * n * 2 + p_reads * n * hp * 2
                            + n * (cp + hp + 1 + cp + 1) * 4
                            + hp * cp * 2)),
    )(a_bf, p_bf, b, w3p, b3p, mask, onehotp)


# ----------------------------------------------------------------------------
# Forward wrapper: lane-dense padding, bf16 weight casts, per-layer kernels
# ----------------------------------------------------------------------------
@jax.jit
def gcn_forward(a_norm, x, w1, b1, w2, b2, w3, b3, train_mask, label_onehot):
    n = x.shape[0]
    h_dim = w1.shape[1]
    n_class = w3.shape[1]
    num_hidden = w2.shape[0]

    hp = _round_up(h_dim, LANE)      # keep padding at exactly 128 lanes
    cp = _round_up(n_class, LANE)

    # Zero-pad feature/class dims to lane width; cast matmul operands to bf16.
    w1p = jnp.zeros((w1.shape[0], hp), jnp.bfloat16).at[:, :h_dim].set(
        w1.astype(jnp.bfloat16))
    b1p = jnp.zeros((1, hp), jnp.float32).at[:, :h_dim].set(b1)
    w2p = jnp.zeros((num_hidden, hp, hp), jnp.bfloat16).at[:, :h_dim, :h_dim].set(
        w2.astype(jnp.bfloat16))
    b2p = jnp.zeros((num_hidden, 1, hp), jnp.float32).at[:, :, :h_dim].set(b2)
    w3p = jnp.zeros((hp, cp), jnp.bfloat16).at[:h_dim, :n_class].set(
        w3.astype(jnp.bfloat16))
    b3p = jnp.zeros((1, cp), jnp.float32).at[:, :n_class].set(b3)
    onehotp = jnp.zeros((n, cp), jnp.float32).at[:, :n_class].set(label_onehot)
    a_bf = a_norm.astype(jnp.bfloat16)

    tm, tk = _pick_tiles(n)
    resident = (n * hp * 2) <= RESIDENT_P_BYTES

    # gc1: P = X @ W1 once, then A_hat @ P + b1
    p = _xw(x, w1p, tm)
    if num_hidden == 0:
        # TODO(synk): F.dropout(h, p, training=True) is stochastic; implemented
        # as the eval-mode identity (inference semantics).
        pred_p, h_p, lrow = _gcn_final_layer(
            a_bf, p, b1p, w3p, b3p, train_mask, onehotp, tm, tk,
            relu=False, resident=resident, n_class=n_class)
    else:
        h = _gcn_layer(a_bf, p, b1p, tm, tk, relu=False, resident=resident)
        # TODO(synk): F.dropout(h, p, training=True) is stochastic; implemented
        # as the eval-mode identity (inference semantics).

        # hidden GCN layers + relu; last one fused with the head epilogue
        for l in range(num_hidden - 1):
            p = _xw(h, w2p[l], tm)
            h = _gcn_layer(a_bf, p, b2p[l], tm, tk, relu=True,
                           resident=resident)
        p = _xw(h, w2p[num_hidden - 1], tm)
        pred_p, h_p, lrow = _gcn_final_layer(
            a_bf, p, b2p[num_hidden - 1], w3p, b3p, train_mask, onehotp,
            tm, tk, relu=True, resident=resident, n_class=n_class)

    # Tiny wrapper-side scalar reduction (keeps the kernel row axis parallel).
    loss = jnp.sum(lrow) / jnp.maximum(jnp.sum(train_mask), 1.0)
    return loss, pred_p[:, :n_class], h_p[:, :h_dim]


# ----------------------------------------------------------------------------
# Glue: build dense normalized adjacency from an edge list (plain JAX)
# ----------------------------------------------------------------------------
def build_normalized_adjacency(edge_index, num_nodes):
    src, dst = edge_index[0], edge_index[1]
    a = jnp.zeros((num_nodes, num_nodes), jnp.float32)
    a = a.at[dst, src].set(1.0)
    a = jnp.maximum(a, a.T)                       # undirected
    a = jnp.maximum(a, jnp.eye(num_nodes))        # add self loops
    deg = jnp.sum(a, axis=1)
    d_inv_sqrt = 1.0 / jnp.sqrt(jnp.maximum(deg, 1e-12))
    return a * d_inv_sqrt[:, None] * d_inv_sqrt[None, :]


# ----------------------------------------------------------------------------
# Pure-JAX reference (sanity check)
# ----------------------------------------------------------------------------
def reference_forward(a_norm, x, w1, b1, w2, b2, w3, b3, train_mask, onehot):
    h = a_norm @ (x @ w1) + b1
    for l in range(w2.shape[0]):
        h = jnp.maximum(a_norm @ (h @ w2[l]) + b2[l], 0.0)
    h = h / jnp.maximum(jnp.linalg.norm(h, axis=1, keepdims=True), 1e-12)
    logits = h @ w3 + b3
    logprob = jax.nn.log_softmax(logits, axis=1)
    per_row = -jnp.sum(onehot * logprob, axis=1, keepdims=True)
    loss = jnp.sum(per_row * train_mask) / jnp.sum(train_mask)
    return loss, logprob, h


# ----------------------------------------------------------------------------
# Main
# ----------------------------------------------------------------------------
if __name__ == "__main__":
    # Small synthetic problem (source_opt): in_dim=16, h_dim=32,
    # num_hidden_layers=2, class_num=8, N=32 nodes, E=64 edges.
    N, IN_DIM, H_DIM, N_LAYERS, N_CLASS, E = 32, 16, 32, 2, 8, 64

    key = jax.random.PRNGKey(0)
    k_feat, k_src, k_dst, k_lab, kw1, kw2, kw3, kb3 = jax.random.split(key, 8)

    feats = jax.random.normal(k_feat, (N, IN_DIM), jnp.float32)
    src = jax.random.randint(k_src, (E,), 0, N)
    dst = jax.random.randint(k_dst, (E,), 0, N)
    edge_index = jnp.stack([src, dst])                       # [2, E]
    labels = jax.random.randint(k_lab, (N,), 0, N_CLASS)

    # Deterministic parameter init (GCNConv weights + zero bias; Linear head).
    w1 = 0.1 * jax.random.normal(kw1, (IN_DIM, H_DIM), jnp.float32)
    b1 = jnp.zeros((1, H_DIM), jnp.float32)
    w2 = 0.1 * jax.random.normal(kw2, (N_LAYERS, H_DIM, H_DIM), jnp.float32)
    b2 = jnp.zeros((N_LAYERS, 1, H_DIM), jnp.float32)
    w3 = 0.1 * jax.random.normal(kw3, (H_DIM, N_CLASS), jnp.float32)
    b3 = 0.1 * jax.random.normal(kb3, (1, N_CLASS), jnp.float32)

    a_norm = build_normalized_adjacency(edge_index, N)
    train_mask = (jnp.arange(N) < N // 2).astype(jnp.float32).reshape(N, 1)
    label_onehot = jax.nn.one_hot(labels, N_CLASS, dtype=jnp.float32)

    loss, prediction, h = gcn_forward(a_norm, feats, w1, b1, w2, b2, w3, b3,
                                      train_mask, label_onehot)
    jax.block_until_ready((loss, prediction, h))

    # Sanity check against a plain-JAX f32 reference of the same math
    # (bf16 MXU operands / bf16 activation storage stay within 5e-2 tolerance).
    ref_loss, ref_pred, ref_h = reference_forward(
        a_norm, feats, w1, b1, w2, b2, w3, b3, train_mask, label_onehot)
    assert np.allclose(np.asarray(loss), np.asarray(ref_loss),
                       rtol=5e-2, atol=5e-2)
    assert np.allclose(np.asarray(prediction), np.asarray(ref_pred),
                       rtol=5e-2, atol=5e-2)
    assert np.allclose(np.asarray(h), np.asarray(ref_h), rtol=5e-2, atol=5e-2)

    print("KERNEL_OK")
</pallas_src>

<mosaic_0001>
module attributes {stable_mosaic.version = 11 : i64} {
  func.func @_xw_kernel(%arg0: i32, %arg1: memref<32x16xf32, #tpu.memory_space<vmem>>, %arg2: memref<16x128xbf16, #tpu.memory_space<vmem>>, %arg3: memref<32x128xbf16, #tpu.memory_space<vmem>>) attributes {dimension_semantics = [#tpu.dimension_semantics<parallel>], iteration_bounds = array<i64: 1>, scalar_prefetch = 0 : i64, scratch_operands = 0 : i64, tpu.core_type = #tpu.core_type<tc>, window_params = [{transform_indices = @transform_0, window_bounds = array<i64: 32, 16>}, {pipeline_mode = #tpu.pipeline_mode<synchronous>, transform_indices = @transform_1, window_bounds = array<i64: 16, 128>}, {transform_indices = @transform_2, window_bounds = array<i64: 32, 128>}]} {
    %c0 = arith.constant 0 : index
    %c0_0 = arith.constant 0 : index
    %0 = vector.load %arg1[%c0, %c0_0] : memref<32x16xf32, #tpu.memory_space<vmem>>, vector<32x16xf32>
    %1 = arith.truncf %0 : vector<32x16xf32> to vector<32x16xbf16>
    %c0_1 = arith.constant 0 : index
    %c0_2 = arith.constant 0 : index
    %2 = vector.load %arg2[%c0_1, %c0_2] : memref<16x128xbf16, #tpu.memory_space<vmem>>, vector<16x128xbf16>
    %cst = arith.constant dense<0.000000e+00> : vector<32x128xf32>
    %3 = tpu.matmul %1, %2, %cst {dimension_numbers = #tpu.dot_dimension_numbers<[1], [0], [0], [1], [0, 0, 1, 1], [], []>} : vector<32x16xbf16>, vector<16x128xbf16>, vector<32x128xf32> -> vector<32x128xf32>
    %4 = arith.truncf %3 : vector<32x128xf32> to vector<32x128xbf16>
    %c0_3 = arith.constant 0 : index
    %c0_4 = arith.constant 0 : index
    %5 = vector.load %arg3[%c0_3, %c0_4] : memref<32x128xbf16, #tpu.memory_space<vmem>>, vector<32x128xbf16>
    tpu.vector_store %arg3[%c0_3, %c0_4], %4 {strides = array<i32>} : memref<32x128xbf16, #tpu.memory_space<vmem>>, vector<32x128xbf16>,
    return
  }
  func.func @transform_0(%arg0: i32) -> (i32, i32) {
    %c0_i32 = arith.constant 0 : i32
    %c0_i32_0 = arith.constant 0 : i32
    return %arg0, %c0_i32 : i32, i32
  }
  func.func @transform_1(%arg0: i32) -> (i32, i32) {
    %c0_i32 = arith.constant 0 : i32
    %c0_i32_0 = arith.constant 0 : i32
    %c0_i32_1 = arith.constant 0 : i32
    return %c0_i32, %c0_i32_0 : i32, i32
  }
  func.func @transform_2(%arg0: i32) -> (i32, i32) {
    %c0_i32 = arith.constant 0 : i32
    %c0_i32_0 = arith.constant 0 : i32
    return %arg0, %c0_i32 : i32, i32
  }
}

module attributes {stable_mosaic.version = 11 : i64} {
  func.func @_gcn_layer_kernel(%arg0: i32, %arg1: i32, %arg2: memref<32x32xbf16, #tpu.memory_space<vmem>>, %arg3: memref<32x128xbf16, #tpu.memory_space<vmem>>, %arg4: memref<1x128xf32, #tpu.memory_space<vmem>>, %arg5: memref<32x128xbf16, #tpu.memory_space<vmem>>, %arg6: memref<32x128xf32, #tpu.memory_space<vmem>>) attributes {dimension_semantics = [#tpu.dimension_semantics<parallel>, #tpu.dimension_semantics<arbitrary>], iteration_bounds = array<i64: 1, 1>, scalar_prefetch = 0 : i64, scratch_operands = 1 : i64, tpu.core_type = #tpu.core_type<tc>, window_params = [{transform_indices = @transform_0, window_bounds = array<i64: 32, 32>}, {pipeline_mode = #tpu.pipeline_mode<synchronous>, transform_indices = @transform_1, window_bounds = array<i64: 32, 128>}, {pipeline_mode = #tpu.pipeline_mode<synchronous>, transform_indices = @transform_2, window_bounds = array<i64: 1, 128>}, {transform_indices = @transform_3, window_bounds = array<i64: 32, 128>}]} {
    %c0_i32 = arith.constant 0 : i32
    %0 = arith.cmpi eq, %arg1, %c0_i32 : i32
    %1 = arith.extui %0 : i1 to i32
    %c0_i32_0 = arith.constant 0 : i32
    %2 = arith.cmpi ne, %1, %c0_i32_0 : i32
    scf.if %2 {
      %cst_9 = arith.constant 0.000000e+00 : f32
      %15 = vector.broadcast %cst_9 : f32 to vector<32x128xf32>
      %c0_10 = arith.constant 0 : index
      %c0_11 = arith.constant 0 : index
      %16 = vector.load %arg6[%c0_10, %c0_11] : memref<32x128xf32, #tpu.memory_space<vmem>>, vector<32x128xf32>
      tpu.vector_store %arg6[%c0_10, %c0_11], %15 {strides = array<i32>} : memref<32x128xf32, #tpu.memory_space<vmem>>, vector<32x128xf32>,
    } else {
    }
    %c32_i32 = arith.constant 32 : i32
    %3 = arith.muli %arg1, %c32_i32 : i32
    %4 = tpu.assume_multiple %3, 32 : i32
    %5 = arith.index_cast %4 : i32 to index
    %c0 = arith.constant 0 : index
    %6 = vector.load %arg3[%5, %c0] : memref<32x128xbf16, #tpu.memory_space<vmem>>, vector<32x128xbf16>
    %c0_1 = arith.constant 0 : index
    %c0_2 = arith.constant 0 : index
    %7 = vector.load %arg6[%c0_1, %c0_2] : memref<32x128xf32, #tpu.memory_space<vmem>>, vector<32x128xf32>
    %c0_3 = arith.constant 0 : index
    %c0_4 = arith.constant 0 : index
    %8 = vector.load %arg2[%c0_3, %c0_4] : memref<32x32xbf16, #tpu.memory_space<vmem>>, vector<32x32xbf16>
    %cst = arith.constant dense<0.000000e+00> : vector<32x128xf32>
    %9 = tpu.matmul %8, %6, %cst {dimension_numbers = #tpu.dot_dimension_numbers<[1], [0], [0], [1], [0, 0, 1, 1], [], []>} : vector<32x32xbf16>, vector<32x128xbf16>, vector<32x128xf32> -> vector<32x128xf32>
    %10 = arith.addf %7, %9 : vector<32x128xf32>
    %c0_5 = arith.constant 0 : index
    %c0_6 = arith.constant 0 : index
    %11 = vector.load %arg6[%c0_5, %c0_6] : memref<32x128xf32, #tpu.memory_space<vmem>>, vector<32x128xf32>
    tpu.vector_store %arg6[%c0_5, %c0_6], %10 {strides = array<i32>} : memref<32x128xf32, #tpu.memory_space<vmem>>, vector<32x128xf32>,
    %c0_i32_7 = arith.constant 0 : i32
    %12 = arith.cmpi eq, %arg1, %c0_i32_7 : i32
    %13 = arith.extui %12 : i1 to i32
    %c0_i32_8 = arith.constant 0 : i32
    %14 = arith.cmpi ne, %13, %c0_i32_8 : i32
    scf.if %14 {
      %c0_9 = arith.constant 0 : index
      %c0_10 = arith.constant 0 : index
      %15 = vector.load %arg6[%c0_9, %c0_10] : memref<32x128xf32, #tpu.memory_space<vmem>>, vector<32x128xf32>
      %c0_11 = arith.constant 0 : index
      %c0_12 = arith.constant 0 : index
      %16 = vector.load %arg4[%c0_11, %c0_12] : memref<1x128xf32, #tpu.memory_space<vmem>>, vector<1x128xf32>
      %17 = vector.broadcast %16 : vector<1x128xf32> to vector<32x128xf32>
      %18 = arith.addf %15, %17 : vector<32x128xf32>
      %19 = arith.truncf %18 : vector<32x128xf32> to vector<32x128xbf16>
      %c0_13 = arith.constant 0 : index
      %c0_14 = arith.constant 0 : index
      %20 = vector.load %arg5[%c0_13, %c0_14] : memref<32x128xbf16, #tpu.memory_space<vmem>>, vector<32x128xbf16>
      tpu.vector_store %arg5[%c0_13, %c0_14], %19 {strides = array<i32>} : memref<32x128xbf16, #tpu.memory_space<vmem>>, vector<32x128xbf16>,
    } else {
    }
    return
  }
  func.func @transform_0(%arg0: i32, %arg1: i32) -> (i32, i32) {
    %c0_i32 = arith.constant 0 : i32
    return %arg0, %arg1 : i32, i32
  }
  func.func @transform_1(%arg0: i32, %arg1: i32) -> (i32, i32) {
    %c0_i32 = arith.constant 0 : i32
    %c0_i32_0 = arith.constant 0 : i32
    %c0_i32_1 = arith.constant 0 : i32
    return %c0_i32, %c0_i32_0 : i32, i32
  }
  func.func @transform_2(%arg0: i32, %arg1: i32) -> (i32, i32) {
    %c0_i32 = arith.constant 0 : i32
    %c0_i32_0 = arith.constant 0 : i32
    %c0_i32_1 = arith.constant 0 : i32
    return %c0_i32, %c0_i32_0 : i32, i32
  }
  func.func @transform_3(%arg0: i32, %arg1: i32) -> (i32, i32) {
    %c0_i32 = arith.constant 0 : i32
    %c0_i32_0 = arith.constant 0 : i32
    return %arg0, %c0_i32 : i32, i32
  }
}

module attributes {stable_mosaic.version = 11 : i64} {
  func.func @_xw_kernel(%arg0: i32, %arg1: memref<32x128xbf16, #tpu.memory_space<vmem>>, %arg2: memref<128x128xbf16, #tpu.memory_space<vmem>>, %arg3: memref<32x128xbf16, #tpu.memory_space<vmem>>) attributes {dimension_semantics = [#tpu.dimension_semantics<parallel>], iteration_bounds = array<i64: 1>, scalar_prefetch = 0 : i64, scratch_operands = 0 : i64, tpu.core_type = #tpu.core_type<tc>, window_params = [{transform_indices = @transform_0, window_bounds = array<i64: 32, 128>}, {pipeline_mode = #tpu.pipeline_mode<synchronous>, transform_indices = @transform_1, window_bounds = array<i64: 128, 128>}, {transform_indices = @transform_2, window_bounds = array<i64: 32, 128>}]} {
    %c0 = arith.constant 0 : index
    %c0_0 = arith.constant 0 : index
    %0 = vector.load %arg1[%c0, %c0_0] : memref<32x128xbf16, #tpu.memory_space<vmem>>, vector<32x128xbf16>
    %c0_1 = arith.constant 0 : index
    %c0_2 = arith.constant 0 : index
    %1 = vector.load %arg2[%c0_1, %c0_2] : memref<128x128xbf16, #tpu.memory_space<vmem>>, vector<128x128xbf16>
    %cst = arith.constant dense<0.000000e+00> : vector<32x128xf32>
    %2 = tpu.matmul %0, %1, %cst {dimension_numbers = #tpu.dot_dimension_numbers<[1], [0], [0], [1], [0, 0, 1, 1], [], []>} : vector<32x128xbf16>, vector<128x128xbf16>, vector<32x128xf32> -> vector<32x128xf32>
    %3 = arith.truncf %2 : vector<32x128xf32> to vector<32x128xbf16>
    %c0_3 = arith.constant 0 : index
    %c0_4 = arith.constant 0 : index
    %4 = vector.load %arg3[%c0_3, %c0_4] : memref<32x128xbf16, #tpu.memory_space<vmem>>, vector<32x128xbf16>
    tpu.vector_store %arg3[%c0_3, %c0_4], %3 {strides = array<i32>} : memref<32x128xbf16, #tpu.memory_space<vmem>>, vector<32x128xbf16>,
    return
  }
  func.func @transform_0(%arg0: i32) -> (i32, i32) {
    %c0_i32 = arith.constant 0 : i32
    %c0_i32_0 = arith.constant 0 : i32
    return %arg0, %c0_i32 : i32, i32
  }
  func.func @transform_1(%arg0: i32) -> (i32, i32) {
    %c0_i32 = arith.constant 0 : i32
    %c0_i32_0 = arith.constant 0 : i32
    %c0_i32_1 = arith.constant 0 : i32
    return %c0_i32, %c0_i32_0 : i32, i32
  }
  func.func @transform_2(%arg0: i32) -> (i32, i32) {
    %c0_i32 = arith.constant 0 : i32
    %c0_i32_0 = arith.constant 0 : i32
    return %arg0, %c0_i32 : i32, i32
  }
}

module attributes {stable_mosaic.version = 11 : i64} {
  func.func @_gcn_layer_kernel(%arg0: i32, %arg1: i32, %arg2: memref<32x32xbf16, #tpu.memory_space<vmem>>, %arg3: memref<32x128xbf16, #tpu.memory_space<vmem>>, %arg4: memref<1x128xf32, #tpu.memory_space<vmem>>, %arg5: memref<32x128xbf16, #tpu.memory_space<vmem>>, %arg6: memref<32x128xf32, #tpu.memory_space<vmem>>) attributes {dimension_semantics = [#tpu.dimension_semantics<parallel>, #tpu.dimension_semantics<arbitrary>], iteration_bounds = array<i64: 1, 1>, scalar_prefetch = 0 : i64, scratch_operands = 1 : i64, tpu.core_type = #tpu.core_type<tc>, window_params = [{transform_indices = @transform_0, window_bounds = array<i64: 32, 32>}, {pipeline_mode = #tpu.pipeline_mode<synchronous>, transform_indices = @transform_1, window_bounds = array<i64: 32, 128>}, {pipeline_mode = #tpu.pipeline_mode<synchronous>, transform_indices = @transform_2, window_bounds = array<i64: 1, 128>}, {transform_indices = @transform_3, window_bounds = array<i64: 32, 128>}]} {
    %c0_i32 = arith.constant 0 : i32
    %0 = arith.cmpi eq, %arg1, %c0_i32 : i32
    %1 = arith.extui %0 : i1 to i32
    %c0_i32_0 = arith.constant 0 : i32
    %2 = arith.cmpi ne, %1, %c0_i32_0 : i32
    scf.if %2 {
      %cst_9 = arith.constant 0.000000e+00 : f32
      %15 = vector.broadcast %cst_9 : f32 to vector<32x128xf32>
      %c0_10 = arith.constant 0 : index
      %c0_11 = arith.constant 0 : index
      %16 = vector.load %arg6[%c0_10, %c0_11] : memref<32x128xf32, #tpu.memory_space<vmem>>, vector<32x128xf32>
      tpu.vector_store %arg6[%c0_10, %c0_11], %15 {strides = array<i32>} : memref<32x128xf32, #tpu.memory_space<vmem>>, vector<32x128xf32>,
    } else {
    }
    %c32_i32 = arith.constant 32 : i32
    %3 = arith.muli %arg1, %c32_i32 : i32
    %4 = tpu.assume_multiple %3, 32 : i32
    %5 = arith.index_cast %4 : i32 to index
    %c0 = arith.constant 0 : index
    %6 = vector.load %arg3[%5, %c0] : memref<32x128xbf16, #tpu.memory_space<vmem>>, vector<32x128xbf16>
    %c0_1 = arith.constant 0 : index
    %c0_2 = arith.constant 0 : index
    %7 = vector.load %arg6[%c0_1, %c0_2] : memref<32x128xf32, #tpu.memory_space<vmem>>, vector<32x128xf32>
    %c0_3 = arith.constant 0 : index
    %c0_4 = arith.constant 0 : index
    %8 = vector.load %arg2[%c0_3, %c0_4] : memref<32x32xbf16, #tpu.memory_space<vmem>>, vector<32x32xbf16>
    %cst = arith.constant dense<0.000000e+00> : vector<32x128xf32>
    %9 = tpu.matmul %8, %6, %cst {dimension_numbers = #tpu.dot_dimension_numbers<[1], [0], [0], [1], [0, 0, 1, 1], [], []>} : vector<32x32xbf16>, vector<32x128xbf16>, vector<32x128xf32> -> vector<32x128xf32>
    %10 = arith.addf %7, %9 : vector<32x128xf32>
    %c0_5 = arith.constant 0 : index
    %c0_6 = arith.constant 0 : index
    %11 = vector.load %arg6[%c0_5, %c0_6] : memref<32x128xf32, #tpu.memory_space<vmem>>, vector<32x128xf32>
    tpu.vector_store %arg6[%c0_5, %c0_6], %10 {strides = array<i32>} : memref<32x128xf32, #tpu.memory_space<vmem>>, vector<32x128xf32>,
    %c0_i32_7 = arith.constant 0 : i32
    %12 = arith.cmpi eq, %arg1, %c0_i32_7 : i32
    %13 = arith.extui %12 : i1 to i32
    %c0_i32_8 = arith.constant 0 : i32
    %14 = arith.cmpi ne, %13, %c0_i32_8 : i32
    scf.if %14 {
      %c0_9 = arith.constant 0 : index
      %c0_10 = arith.constant 0 : index
      %15 = vector.load %arg6[%c0_9, %c0_10] : memref<32x128xf32, #tpu.memory_space<vmem>>, vector<32x128xf32>
      %c0_11 = arith.constant 0 : index
      %c0_12 = arith.constant 0 : index
      %16 = vector.load %arg4[%c0_11, %c0_12] : memref<1x128xf32, #tpu.memory_space<vmem>>, vector<1x128xf32>
      %17 = vector.broadcast %16 : vector<1x128xf32> to vector<32x128xf32>
      %18 = arith.addf %15, %17 : vector<32x128xf32>
      %cst_13 = arith.constant 0.000000e+00 : f32
      %19 = vector.broadcast %cst_13 : f32 to vector<32x128xf32>
      %20 = arith.maximumf %18, %19 : vector<32x128xf32>
      %21 = arith.truncf %20 : vector<32x128xf32> to vector<32x128xbf16>
      %c0_14 = arith.constant 0 : index
      %c0_15 = arith.constant 0 : index
      %22 = vector.load %arg5[%c0_14, %c0_15] : memref<32x128xbf16, #tpu.memory_space<vmem>>, vector<32x128xbf16>
      tpu.vector_store %arg5[%c0_14, %c0_15], %21 {strides = array<i32>} : memref<32x128xbf16, #tpu.memory_space<vmem>>, vector<32x128xbf16>,
    } else {
    }
    return
  }
  func.func @transform_0(%arg0: i32, %arg1: i32) -> (i32, i32) {
    %c0_i32 = arith.constant 0 : i32
    return %arg0, %arg1 : i32, i32
  }
  func.func @transform_1(%arg0: i32, %arg1: i32) -> (i32, i32) {
    %c0_i32 = arith.constant 0 : i32
    %c0_i32_0 = arith.constant 0 : i32
    %c0_i32_1 = arith.constant 0 : i32
    return %c0_i32, %c0_i32_0 : i32, i32
  }
  func.func @transform_2(%arg0: i32, %arg1: i32) -> (i32, i32) {
    %c0_i32 = arith.constant 0 : i32
    %c0_i32_0 = arith.constant 0 : i32
    %c0_i32_1 = arith.constant 0 : i32
    return %c0_i32, %c0_i32_0 : i32, i32
  }
  func.func @transform_3(%arg0: i32, %arg1: i32) -> (i32, i32) {
    %c0_i32 = arith.constant 0 : i32
    %c0_i32_0 = arith.constant 0 : i32
    return %arg0, %c0_i32 : i32, i32
  }
}

module attributes {stable_mosaic.version = 11 : i64} {
  func.func @_gcn_final_kernel(%arg0: i32, %arg1: i32, %arg2: memref<32x32xbf16, #tpu.memory_space<vmem>>, %arg3: memref<32x128xbf16, #tpu.memory_space<vmem>>, %arg4: memref<1x128xf32, #tpu.memory_space<vmem>>, %arg5: memref<128x128xbf16, #tpu.memory_space<vmem>>, %arg6: memref<1x128xf32, #tpu.memory_space<vmem>>, %arg7: memref<32x1xf32, #tpu.memory_space<vmem>>, %arg8: memref<32x128xf32, #tpu.memory_space<vmem>>, %arg9: memref<32x128xf32, #tpu.memory_space<vmem>>, %arg10: memref<32x128xf32, #tpu.memory_space<vmem>>, %arg11: memref<32x1xf32, #tpu.memory_space<vmem>>, %arg12: memref<32x128xf32, #tpu.memory_space<vmem>>) attributes {dimension_semantics = [#tpu.dimension_semantics<parallel>, #tpu.dimension_semantics<arbitrary>], iteration_bounds = array<i64: 1, 1>, scalar_prefetch = 0 : i64, scratch_operands = 1 : i64, tpu.core_type = #tpu.core_type<tc>, window_params = [{transform_indices = @transform_0, window_bounds = array<i64: 32, 32>}, {pipeline_mode = #tpu.pipeline_mode<synchronous>, transform_indices = @transform_1, window_bounds = array<i64: 32, 128>}, {pipeline_mode = #tpu.pipeline_mode<synchronous>, transform_indices = @transform_2, window_bounds = array<i64: 1, 128>}, {pipeline_mode = #tpu.pipeline_mode<synchronous>, transform_indices = @transform_3, window_bounds = array<i64: 128, 128>}, {pipeline_mode = #tpu.pipeline_mode<synchronous>, transform_indices = @transform_4, window_bounds = array<i64: 1, 128>}, {transform_indices = @transform_5, window_bounds = array<i64: 32, 1>}, {transform_indices = @transform_6, window_bounds = array<i64: 32, 128>}, {transform_indices = @transform_7, window_bounds = array<i64: 32, 128>}, {transform_indices = @transform_8, window_bounds = array<i64: 32, 128>}, {transform_indices = @transform_9, window_bounds = array<i64: 32, 1>}]} {
    %c0_i32 = arith.constant 0 : i32
    %0 = arith.cmpi eq, %arg1, %c0_i32 : i32
    %1 = arith.extui %0 : i1 to i32
    %c0_i32_0 = arith.constant 0 : i32
    %2 = arith.cmpi ne, %1, %c0_i32_0 : i32
    scf.if %2 {
      %cst_9 = arith.constant 0.000000e+00 : f32
      %15 = vector.broadcast %cst_9 : f32 to vector<32x128xf32>
      %c0_10 = arith.constant 0 : index
      %c0_11 = arith.constant 0 : index
      %16 = vector.load %arg12[%c0_10, %c0_11] : memref<32x128xf32, #tpu.memory_space<vmem>>, vector<32x128xf32>
      tpu.vector_store %arg12[%c0_10, %c0_11], %15 {strides = array<i32>} : memref<32x128xf32, #tpu.memory_space<vmem>>, vector<32x128xf32>,
    } else {
    }
    %c32_i32 = arith.constant 32 : i32
    %3 = arith.muli %arg1, %c32_i32 : i32
    %4 = tpu.assume_multiple %3, 32 : i32
    %5 = arith.index_cast %4 : i32 to index
    %c0 = arith.constant 0 : index
    %6 = vector.load %arg3[%5, %c0] : memref<32x128xbf16, #tpu.memory_space<vmem>>, vector<32x128xbf16>
    %c0_1 = arith.constant 0 : index
    %c0_2 = arith.constant 0 : index
    %7 = vector.load %arg12[%c0_1, %c0_2] : memref<32x128xf32, #tpu.memory_space<vmem>>, vector<32x128xf32>
    %c0_3 = arith.constant 0 : index
    %c0_4 = arith.constant 0 : index
    %8 = vector.load %arg2[%c0_3, %c0_4] : memref<32x32xbf16, #tpu.memory_space<vmem>>, vector<32x32xbf16>
    %cst = arith.constant dense<0.000000e+00> : vector<32x128xf32>
    %9 = tpu.matmul %8, %6, %cst {dimension_numbers = #tpu.dot_dimension_numbers<[1], [0], [0], [1], [0, 0, 1, 1], [], []>} : vector<32x32xbf16>, vector<32x128xbf16>, vector<32x128xf32> -> vector<32x128xf32>
    %10 = arith.addf %7, %9 : vector<32x128xf32>
    %c0_5 = arith.constant 0 : index
    %c0_6 = arith.constant 0 : index
    %11 = vector.load %arg12[%c0_5, %c0_6] : memref<32x128xf32, #tpu.memory_space<vmem>>, vector<32x128xf32>
    tpu.vector_store %arg12[%c0_5, %c0_6], %10 {strides = array<i32>} : memref<32x128xf32, #tpu.memory_space<vmem>>, vector<32x128xf32>,
    %c0_i32_7 = arith.constant 0 : i32
    %12 = arith.cmpi eq, %arg1, %c0_i32_7 : i32
    %13 = arith.extui %12 : i1 to i32
    %c0_i32_8 = arith.constant 0 : i32
    %14 = arith.cmpi ne, %13, %c0_i32_8 : i32
    scf.if %14 {
      %c0_9 = arith.constant 0 : index
      %c0_10 = arith.constant 0 : index
      %15 = vector.load %arg12[%c0_9, %c0_10] : memref<32x128xf32, #tpu.memory_space<vmem>>, vector<32x128xf32>
      %c0_11 = arith.constant 0 : index
      %c0_12 = arith.constant 0 : index
      %16 = vector.load %arg4[%c0_11, %c0_12] : memref<1x128xf32, #tpu.memory_space<vmem>>, vector<1x128xf32>
      %17 = vector.broadcast %16 : vector<1x128xf32> to vector<32x128xf32>
      %18 = arith.addf %15, %17 : vector<32x128xf32>
      %cst_13 = arith.constant 0.000000e+00 : f32
      %19 = vector.broadcast %cst_13 : f32 to vector<32x128xf32>
      %20 = arith.maximumf %18, %19 : vector<32x128xf32>
      %21 = arith.mulf %20, %20 : vector<32x128xf32>
      %cst_14 = arith.constant dense<0.000000e+00> : vector<32xf32>
      %22 = vector.multi_reduction <add>, %21, %cst_14 [1] : vector<32x128xf32> to vector<32xf32>
      %23 = vector.shape_cast %22 : vector<32xf32> to vector<32x1xf32>
      %cst_15 = arith.constant 1.000000e-24 : f32
      %24 = vector.broadcast %cst_15 : f32 to vector<32x1xf32>
      %25 = arith.maximumf %23, %24 : vector<32x1xf32>
      %26 = math.rsqrt %25 : vector<32x1xf32>
      %27 = vector.broadcast %26 : vector<32x1xf32> to vector<32x128xf32>
      %28 = arith.mulf %20, %27 : vector<32x128xf32>
      %c0_16 = arith.constant 0 : index
      %c0_17 = arith.constant 0 : index
      %29 = vector.load %arg10[%c0_16, %c0_17] : memref<32x128xf32, #tpu.memory_space<vmem>>, vector<32x128xf32>
      tpu.vector_store %arg10[%c0_16, %c0_17], %28 {strides = array<i32>} : memref<32x128xf32, #tpu.memory_space<vmem>>, vector<32x128xf32>,
      %30 = arith.truncf %28 : vector<32x128xf32> to vector<32x128xbf16>
      %c0_18 = arith.constant 0 : index
      %c0_19 = arith.constant 0 : index
      %31 = vector.load %arg5[%c0_18, %c0_19] : memref<128x128xbf16, #tpu.memory_space<vmem>>, vector<128x128xbf16>
      %cst_20 = arith.constant dense<0.000000e+00> : vector<32x128xf32>
      %32 = tpu.matmul %30, %31, %cst_20 {dimension_numbers = #tpu.dot_dimension_numbers<[1], [0], [0], [1], [0, 0, 1, 1], [], []>} : vector<32x128xbf16>, vector<128x128xbf16>, vector<32x128xf32> -> vector<32x128xf32>
      %c0_21 = arith.constant 0 : index
      %c0_22 = arith.constant 0 : index
      %33 = vector.load %arg6[%c0_21, %c0_22] : memref<1x128xf32, #tpu.memory_space<vmem>>, vector<1x128xf32>
      %34 = vector.broadcast %33 : vector<1x128xf32> to vector<32x128xf32>
      %35 = arith.addf %32, %34 : vector<32x128xf32>
      %36 = tpu.iota {dimensions = array<i32: 1>} : vector<32x128xi32>
      %c8_i32 = arith.constant 8 : i32
      %37 = vector.broadcast %c8_i32 : i32 to vector<32x128xi32>
      %38 = arith.cmpi slt, %36, %37 : vector<32x128xi32>
      %cst_23 = arith.constant -1.000000e+30 : f32
      %39 = vector.broadcast %cst_23 : f32 to vector<32x128xf32>
      %40 = arith.select %38, %35, %39 : vector<32x128xi1>, vector<32x128xf32>
      %cst_24 = arith.constant dense<0xFF800000> : vector<32xf32>
      %41 = vector.multi_reduction <maximumf>, %40, %cst_24 [1] : vector<32x128xf32> to vector<32xf32>
      %42 = vector.shape_cast %41 : vector<32xf32> to vector<32x1xf32>
      %43 = vector.broadcast %42 : vector<32x1xf32> to vector<32x128xf32>
      %44 = arith.subf %40, %43 : vector<32x128xf32>
      %45 = math.exp %44 : vector<32x128xf32>
      %cst_25 = arith.constant dense<0.000000e+00> : vector<32xf32>
      %46 = vector.multi_reduction <add>, %45, %cst_25 [1] : vector<32x128xf32> to vector<32xf32>
      %47 = vector.shape_cast %46 : vector<32xf32> to vector<32x1xf32>
      %48 = math.log %47 : vector<32x1xf32>
      %49 = arith.addf %42, %48 : vector<32x1xf32>
      %50 = vector.broadcast %49 : vector<32x1xf32> to vector<32x128xf32>
      %51 = arith.subf %40, %50 : vector<32x128xf32>
      %c0_26 = arith.constant 0 : index
      %c0_27 = arith.constant 0 : index
      %52 = vector.load %arg9[%c0_26, %c0_27] : memref<32x128xf32, #tpu.memory_space<vmem>>, vector<32x128xf32>
      tpu.vector_store %arg9[%c0_26, %c0_27], %51 {strides = array<i32>} : memref<32x128xf32, #tpu.memory_space<vmem>>, vector<32x128xf32>,
      %c0_28 = arith.constant 0 : index
      %c0_29 = arith.constant 0 : index
      %53 = vector.load %arg8[%c0_28, %c0_29] : memref<32x128xf32, #tpu.memory_space<vmem>>, vector<32x128xf32>
      %54 = arith.mulf %53, %51 : vector<32x128xf32>
      %cst_30 = arith.constant dense<0.000000e+00> : vector<32xf32>
      %55 = vector.multi_reduction <add>, %54, %cst_30 [1] : vector<32x128xf32> to vector<32xf32>
      %56 = vector.shape_cast %55 : vector<32xf32> to vector<32x1xf32>
      %cst_31 = arith.constant 0.000000e+00 : f32
      %57 = vector.broadcast %cst_31 : f32 to vector<32x1xf32>
      %58 = arith.subf %57, %56 : vector<32x1xf32>
      %c0_32 = arith.constant 0 : index
      %c0_33 = arith.constant 0 : index
      %59 = vector.load %arg7[%c0_32, %c0_33] : memref<32x1xf32, #tpu.memory_space<vmem>>, vector<32x1xf32>
      %60 = arith.mulf %58, %59 : vector<32x1xf32>
      %c0_34 = arith.constant 0 : index
      %c0_35 = arith.constant 0 : index
      %61 = vector.load %arg11[%c0_34, %c0_35] : memref<32x1xf32, #tpu.memory_space<vmem>>, vector<32x1xf32>
      tpu.vector_store %arg11[%c0_34, %c0_35], %60 {strides = array<i32>} : memref<32x1xf32, #tpu.memory_space<vmem>>, vector<32x1xf32>,
    } else {
    }
    return
  }
  func.func @transform_0(%arg0: i32, %arg1: i32) -> (i32, i32) {
    %c0_i32 = arith.constant 0 : i32
    return %arg0, %arg1 : i32, i32
  }
  func.func @transform_1(%arg0: i32, %arg1: i32) -> (i32, i32) {
    %c0_i32 = arith.constant 0 : i32
    %c0_i32_0 = arith.constant 0 : i32
    %c0_i32_1 = arith.constant 0 : i32
    return %c0_i32, %c0_i32_0 : i32, i32
  }
  func.func @transform_2(%arg0: i32, %arg1: i32) -> (i32, i32) {
    %c0_i32 = arith.constant 0 : i32
    %c0_i32_0 = arith.constant 0 : i32
    %c0_i32_1 = arith.constant 0 : i32
    return %c0_i32, %c0_i32_0 : i32, i32
  }
  func.func @transform_3(%arg0: i32, %arg1: i32) -> (i32, i32) {
    %c0_i32 = arith.constant 0 : i32
    %c0_i32_0 = arith.constant 0 : i32
    %c0_i32_1 = arith.constant 0 : i32
    return %c0_i32, %c0_i32_0 : i32, i32
  }
  func.func @transform_4(%arg0: i32, %arg1: i32) -> (i32, i32) {
    %c0_i32 = arith.constant 0 : i32
    %c0_i32_0 = arith.constant 0 : i32
    %c0_i32_1 = arith.constant 0 : i32
    return %c0_i32, %c0_i32_0 : i32, i32
  }
  func.func @transform_5(%arg0: i32, %arg1: i32) -> (i32, i32) {
    %c0_i32 = arith.constant 0 : i32
    %c0_i32_0 = arith.constant 0 : i32
    return %arg0, %c0_i32 : i32, i32
  }
  func.func @transform_6(%arg0: i32, %arg1: i32) -> (i32, i32) {
    %c0_i32 = arith.constant 0 : i32
    %c0_i32_0 = arith.constant 0 : i32
    return %arg0, %c0_i32 : i32, i32
  }
  func.func @transform_7(%arg0: i32, %arg1: i32) -> (i32, i32) {
    %c0_i32 = arith.constant 0 : i32
    %c0_i32_0 = arith.constant 0 : i32
    return %arg0, %c0_i32 : i32, i32
  }
  func.func @transform_8(%arg0: i32, %arg1: i32) -> (i32, i32) {
    %c0_i32 = arith.constant 0 : i32
    %c0_i32_0 = arith.constant 0 : i32
    return %arg0, %c0_i32 : i32, i32
  }
  func.func @transform_9(%arg0: i32, %arg1: i32) -> (i32, i32) {
    %c0_i32 = arith.constant 0 : i32
    %c0_i32_0 = arith.constant 0 : i32
    return %arg0, %c0_i32 : i32, i32
  }
}

</mosaic_0001>

<bundles_post_ra>
// kernel: gcn_forward.7
= control target key start
LH: loop header
LB: loop body
LE: loop exit
PB: predicated region body
PF: predicated region fallthrough
CT: control target
= control target key end

     0   :  { %vm62_vm0 = vcmask 261120   ;;  %s202_s1 = inlined_call_operand.vmem [shape: bf16[32,128], index: 1, kind: input, shape index: {}]   ;;  %s203_s2 = inlined_call_operand.vmem [shape: f32[1,128], index: 2, kind: input, shape index: {}]   ;;  %s204_s0 = inlined_call_operand.vmem [shape: bf16[32,32], index: 0, kind: input, shape index: {}]   ;;  %s205_s3 = inlined_call_operand.vmem [shape: bf16[32,128], index: 3, kind: output, shape index: {}]  }
   0x1   :  { %v144_v0 = vld [vmem:[%s202_s1 + $0x8] sm:$0xff]  ;;  %v143_v1 = vld [vmem:[%s202_s1] sm:$0xff] }
   0x2   :  { %75 = vmatpush.bf16.msra.mxu0 %v144_v0  ;;  %158 = vmatpush.bf16.msra.mxu1 %v144_v0  ;;  %v145_v2 = vld [vmem:[%s204_s0] sm:$0xff]  ;;  %v146_v3 = vld [vmem:[%s204_s0 + $0x8] sm:$0xff] }
   0x3   :  { %v160_v6 = vld [vmem:[%s203_s2] ss:$0 sm:$0xff] }
   0x6   :  { %76 = vmatpush.bf16.msra.mxu0 %v143_v1  ;;  %159 = vmatpush.bf16.msra.mxu1 %v143_v1 }
   0x9   :  { %141 = vmatmul.msk.bf16.vlgmr.msra.gmra.mxu0 %vm62_vm0, %v145_v2  ;;  %142 = vmatmul.msk.bf16.vlgmr.msra.gmra.mxu1 %vm62_vm0, %v146_v3 }
  0x86   :  { %v78_v4 = vpop.f32.mrf.mxu0  ;;  %v83_v5 = vpop.f32.mrf.mxu1 }
  0x87   :  { %v107_v9 = vadd.f32 %v160_v6, %v78_v4  ;;  %v109_v10 = vadd.f32 %v160_v6, %v83_v5 }
  0x8e   :  { %v80_v7 = vpop.f32.mrf.mxu0  ;;  %v85_v8 = vpop.f32.mrf.mxu1 }
  0x8f   :  { %v108_v11 = vadd.f32 %v160_v6, %v80_v7  ;;  %v110_v12 = vadd.f32 %v160_v6, %v85_v8 }
  0x91   :  { %v150_v13 = vpack.c.bf16 %v108_v11, %v107_v9  ;;  %v155_v14 = vpack.c.bf16 %v110_v12, %v109_v10 }
  0x93   :  { %151 = vst [vmem:[%s205_s3] sm:$0xff] %v150_v13  }
  0x94   :  { %157 = vst [vmem:[%s205_s3 + $0x8] sm:$0xff] %v155_v14  }

// kernel: gcn_forward.6
= control target key start
LH: loop header
LB: loop body
LE: loop exit
PB: predicated region body
PF: predicated region fallthrough
CT: control target
= control target key end

     0   :  { %vm26_vm0 = vcmask 130048   ;;  %s119_s1 = inlined_call_operand.vmem [shape: bf16[16,128], index: 1, kind: input, shape index: {}]   ;;  %s120_s0 = inlined_call_operand.vmem [shape: f32[32,16], index: 0, kind: input, shape index: {}]   ;;  %s121_s2 = inlined_call_operand.vmem [shape: bf16[32,128], index: 2, kind: output, shape index: {}]  }
   0x1   :  { %v70_v0 = vld [vmem:[%s119_s1] sm:$0xff]  ;;  %v13_v2 = vld [vmem:[%s120_s0 + $0x8] sm:$0xff]  ;;  %v14_v4 = vld [vmem:[%s120_s0 + $0x10] sm:$0xff] }
   0x2   :  { %v12_v1 = vld [vmem:[%s120_s0] sm:$0xff]  ;;  %v15_v5 = vld [vmem:[%s120_s0 + $0x18] sm:$0xff]  ;;  %40 = vmatpush.bf16.msra.mxu0 %v70_v0  ;;  %82 = vmatpush.bf16.msra.mxu1 %v70_v0 }
   0x3   :  { %v16_v3 = vpack.c.bf16 %v13_v2, %v12_v1  ;;  %v17_v6 = vpack.c.bf16 %v15_v5, %v14_v4 }
   0x5   :  { %68 = vmatmul.msk.bf16.vlgmr.msra.gmra.mxu0 %vm26_vm0, %v16_v3  ;;  %69 = vmatmul.msk.bf16.vlgmr.msra.gmra.mxu1 %vm26_vm0, %v17_v6 }
  0x82   :  { %v42_v7 = vpop.f32.mrf.mxu0  ;;  %v47_v8 = vpop.f32.mrf.mxu1 }
  0x8a   :  { %v44_v9 = vpop.f32.mrf.mxu0  ;;  %v49_v10 = vpop.f32.mrf.mxu1 }
  0x8b   :  { %v74_v11 = vpack.c.bf16 %v44_v9, %v42_v7  ;;  %v79_v12 = vpack.c.bf16 %v49_v10, %v47_v8 }
  0x8d   :  { %75 = vst [vmem:[%s121_s2] sm:$0xff] %v74_v11  }
  0x8e   :  { %81 = vst [vmem:[%s121_s2 + $0x8] sm:$0xff] %v79_v12  }

// kernel: gcn_forward.8
= control target key start
LH: loop header
LB: loop body
LE: loop exit
PB: predicated region body
PF: predicated region fallthrough
CT: control target
= control target key end

     0   :  { %s242_s1 = inlined_call_operand.vmem [shape: bf16[128,128], index: 1, kind: input, shape index: {}]   ;;  %s243_s0 = inlined_call_operand.vmem [shape: bf16[32,128], index: 0, kind: input, shape index: {}]   ;;  %s244_s2 = inlined_call_operand.vmem [shape: bf16[32,128], index: 2, kind: output, shape index: {}]  }
   0x1   :  { %v171_v0 = vld [vmem:[%s242_s1 + $0x38] sm:$0xff]  ;;  %v170_v1 = vld [vmem:[%s242_s1 + $0x30] sm:$0xff]  ;;  %v169_v2 = vld [vmem:[%s242_s1 + $0x28] sm:$0xff] }
   0x2   :  { %91 = vmatpush.bf16.msra.mxu0 %v171_v0  ;;  %183 = vmatpush.bf16.msra.mxu1 %v171_v0  ;;  %v168_v3 = vld [vmem:[%s242_s1 + $0x20] sm:$0xff]  ;;  %v167_v4 = vld [vmem:[%s242_s1 + $0x18] sm:$0xff]  ;;  %v166_v5 = vld [vmem:[%s242_s1 + $0x10] sm:$0xff] }
   0x3   :  { %v165_v6 = vld [vmem:[%s242_s1 + $0x8] sm:$0xff]  ;;  %v164_v7 = vld [vmem:[%s242_s1] sm:$0xff] }
   0x4   :  { %v162_v8 = vld [vmem:[%s243_s0] sm:$0xff]  ;;  %v163_v9 = vld [vmem:[%s243_s0 + $0x8] sm:$0xff] }
   0x6   :  { %92 = vmatpush.bf16.msra.mxu0 %v170_v1  ;;  %184 = vmatpush.bf16.msra.mxu1 %v170_v1 }
   0xa   :  { %93 = vmatpush.bf16.msra.mxu0 %v169_v2  ;;  %185 = vmatpush.bf16.msra.mxu1 %v169_v2 }
   0xe   :  { %94 = vmatpush.bf16.msra.mxu0 %v168_v3  ;;  %186 = vmatpush.bf16.msra.mxu1 %v168_v3 }
  0x12   :  { %95 = vmatpush.bf16.msra.mxu0 %v167_v4  ;;  %187 = vmatpush.bf16.msra.mxu1 %v167_v4 }
  0x16   :  { %96 = vmatpush.bf16.msra.mxu0 %v166_v5  ;;  %188 = vmatpush.bf16.msra.mxu1 %v166_v5 }
  0x1a   :  { %97 = vmatpush.bf16.msra.mxu0 %v165_v6  ;;  %189 = vmatpush.bf16.msra.mxu1 %v165_v6 }
  0x1e   :  { %98 = vmatpush.bf16.msra.mxu0 %v164_v7  ;;  %190 = vmatpush.bf16.msra.mxu1 %v164_v7 }
  0x21   :  { %99 = vmatmul.bf16.vlgmr.msra.gmra.mxu0 %v162_v8  ;;  %104 = vmatmul.bf16.vlgmr.msra.gmra.mxu1 %v163_v9 }
  0x9e   :  { %v100_v10 = vpop.f32.mrf.mxu0  ;;  %v105_v11 = vpop.f32.mrf.mxu1 }
  0xa6   :  { %v102_v12 = vpop.f32.mrf.mxu0  ;;  %v107_v13 = vpop.f32.mrf.mxu1 }
  0xa7   :  { %v175_v14 = vpack.c.bf16 %v102_v12, %v100_v10  ;;  %v180_v15 = vpack.c.bf16 %v107_v13, %v105_v11 }
  0xa9   :  { %176 = vst [vmem:[%s244_s2] sm:$0xff] %v175_v14  }
  0xaa   :  { %182 = vst [vmem:[%s244_s2 + $0x8] sm:$0xff] %v180_v15  }

// kernel: gcn_forward.9
= control target key start
LH: loop header
LB: loop body
LE: loop exit
PB: predicated region body
PF: predicated region fallthrough
CT: control target
= control target key end

     0   :  { %vm62_vm0 = vcmask 261120   ;;  %s206_s1 = inlined_call_operand.vmem [shape: bf16[32,128], index: 1, kind: input, shape index: {}]   ;;  %s207_s2 = inlined_call_operand.vmem [shape: f32[1,128], index: 2, kind: input, shape index: {}]   ;;  %s208_s0 = inlined_call_operand.vmem [shape: bf16[32,32], index: 0, kind: input, shape index: {}]   ;;  %s209_s3 = inlined_call_operand.vmem [shape: bf16[32,128], index: 3, kind: output, shape index: {}]  }
   0x1   :  { %v148_v0 = vld [vmem:[%s206_s1 + $0x8] sm:$0xff]  ;;  %v147_v1 = vld [vmem:[%s206_s1] sm:$0xff] }
   0x2   :  { %75 = vmatpush.bf16.msra.mxu0 %v148_v0  ;;  %162 = vmatpush.bf16.msra.mxu1 %v148_v0  ;;  %v149_v2 = vld [vmem:[%s208_s0] sm:$0xff]  ;;  %v150_v3 = vld [vmem:[%s208_s0 + $0x8] sm:$0xff] }
   0x3   :  { %v164_v6 = vld [vmem:[%s207_s2] ss:$0 sm:$0xff] }
   0x6   :  { %76 = vmatpush.bf16.msra.mxu0 %v147_v1  ;;  %163 = vmatpush.bf16.msra.mxu1 %v147_v1 }
   0x9   :  { %145 = vmatmul.msk.bf16.vlgmr.msra.gmra.mxu0 %vm62_vm0, %v149_v2  ;;  %146 = vmatmul.msk.bf16.vlgmr.msra.gmra.mxu1 %vm62_vm0, %v150_v3 }
  0x86   :  { %v78_v4 = vpop.f32.mrf.mxu0  ;;  %v83_v5 = vpop.f32.mrf.mxu1 }
  0x87   :  { %v107_v7 = vadd.f32 %v164_v6, %v78_v4  ;;  %v109_v8 = vadd.f32 %v164_v6, %v83_v5 }
  0x89   :  { %v111_v13 = vmax.f32 %v107_v7, 0.0  ;;  %v113_v14 = vmax.f32 %v109_v8, 0.0 }
  0x8e   :  { %v80_v9 = vpop.f32.mrf.mxu0  ;;  %v85_v10 = vpop.f32.mrf.mxu1 }
  0x8f   :  { %v108_v11 = vadd.f32 %v164_v6, %v80_v9  ;;  %v110_v12 = vadd.f32 %v164_v6, %v85_v10 }
  0x91   :  { %v112_v15 = vmax.f32 %v108_v11, 0.0  ;;  %v114_v16 = vmax.f32 %v110_v12, 0.0 }
  0x93   :  { %v154_v17 = vpack.c.bf16 %v112_v15, %v111_v13  ;;  %v159_v18 = vpack.c.bf16 %v114_v16, %v113_v14 }
  0x95   :  { %155 = vst [vmem:[%s209_s3] sm:$0xff] %v154_v17  }
  0x96   :  { %161 = vst [vmem:[%s209_s3 + $0x8] sm:$0xff] %v159_v18  }

// kernel: gcn_forward.11
= control target key start
LH: loop header
LB: loop body
LE: loop exit
PB: predicated region body
PF: predicated region fallthrough
CT: control target
= control target key end

     0   :  { %s700_s0 = inlined_call_operand.vmem [shape: bf16[32,32], index: 0, kind: input, shape index: {}]   ;;  %s701_s1 = inlined_call_operand.vmem [shape: bf16[32,128], index: 1, kind: input, shape index: {}]   ;;  %s702_s2 = inlined_call_operand.vmem [shape: f32[1,128], index: 2, kind: input, shape index: {}]   ;;  %s703_s3 = inlined_call_operand.vmem [shape: bf16[128,128], index: 3, kind: input, shape index: {}]   ;;  %s704_s4 = inlined_call_operand.vmem [shape: f32[1,128], index: 4, kind: input, shape index: {}]   ;;  %s705_s5 = inlined_call_operand.vmem [shape: f32[32,1], index: 5, kind: input, shape index: {}]   ;;  %s706_s6 = inlined_call_operand.vmem [shape: f32[32,128], index: 6, kind: input, shape index: {}]   ;;  %s707_s7 = inlined_call_operand.vmem [shape: f32[32,128], index: 7, kind: output, shape index: {0}]   ;;  %s708_s8 = inlined_call_operand.hbm [shape: f32[32,128], index: 8, kind: output, shape index: {1}]   ;;  %s709_s9 = inlined_call_operand.vmem [shape: f32[32,1], index: 9, kind: output, shape index: {2}]  }
   0x1   :  { %v451_v0 = vld [vmem:[%s701_s1 + $0x8] sm:$0xff]  ;;  %v450_v1 = vld [vmem:[%s701_s1] sm:$0xff] }
   0x2   :  { %91 = vmatpush.bf16.msra.mxu0 %v451_v0 }
   0x3   :  { %15 = vsyncpa [#allocation4], 0  ;;  %v452_v2 = vld [vmem:[%s700_s0] sm:$0xff]  ;;  %vm78_vm0 = vcmask 261120   ;;  %v453_v3 = vld [vmem:[%s700_s0 + $0x8] sm:$0xff]  ;;  %s525_s20 = smov [#allocation3]  }
   0x4   :  { %v473_v4 = vld [vmem:[%s702_s2] ss:$0 sm:$0xff]  ;;  %v461_v21 = vld [vmem:[%s703_s3 + $0x38] sm:$0xff]  ;;  %v460_v22 = vld [vmem:[%s703_s3 + $0x30] sm:$0xff]  ;;  %s378_s21 = sshll.u32 %s525_s20, 4  ;;  %s380_s24 = sshll.u32 %s708_s8, 4  ;;  %s379_s21 = int_to_ptr.vmem [resolvable:$true] %s378_s21  ;;  %s381_s24 = int_to_ptr.hbm [resolvable:$true] %s380_s24 }
   0x5   :  { %265 = vmatpush.bf16.msra.mxu1 %v461_v21  ;;  %462 = vmatpush.bf16.msra.mxu2 %v461_v21  ;;  %v459_v23 = vld [vmem:[%s703_s3 + $0x28] sm:$0xff]  ;;  %v458_v24 = vld [vmem:[%s703_s3 + $0x20] sm:$0xff]  ;;  %v457_v25 = vld [vmem:[%s703_s3 + $0x18] sm:$0xff]  ;;  %s526_s25 = smov 128   ;;  %s527_s26 = smov 8   ;;  %vm367_vm14 = vcmask 7168  }
   0x6   :  { %92 = vmatpush.bf16.msra.mxu0 %v450_v1  ;;  %v456_v26 = vld [vmem:[%s703_s3 + $0x10] sm:$0xff]  ;;  %v455_v27 = vld [vmem:[%s703_s3 + $0x8] sm:$0xff]  ;;  %v454_v28 = vld [vmem:[%s703_s3] sm:$0xff] }
   0x9   :  { %416 = vmatmul.msk.bf16.vlgmr.msra.gmra.mxu0 %vm78_vm0, %v452_v2  ;;  %266 = vmatpush.bf16.msra.mxu1 %v460_v22 }
   0xa   :  { %463 = vmatpush.bf16.msra.mxu2 %v460_v22 }
   0xd   :  { %267 = vmatpush.bf16.msra.mxu1 %v459_v23 }
   0xe   :  { %464 = vmatpush.bf16.msra.mxu2 %v459_v23 }
  0x11   :  { %268 = vmatpush.bf16.msra.mxu1 %v458_v24 }
  0x12   :  { %465 = vmatpush.bf16.msra.mxu2 %v458_v24 }
  0x15   :  { %269 = vmatpush.bf16.msra.mxu1 %v457_v25 }
  0x16   :  { %466 = vmatpush.bf16.msra.mxu2 %v457_v25 }
  0x19   :  { %417 = vmatmul.msk.bf16.gmra.mxu0 %vm78_vm0, %v453_v3  ;;  %270 = vmatpush.bf16.msra.mxu1 %v456_v26 }
  0x1a   :  { %467 = vmatpush.bf16.msra.mxu2 %v456_v26 }
  0x1d   :  { %271 = vmatpush.bf16.msra.mxu1 %v455_v27 }
  0x1e   :  { %468 = vmatpush.bf16.msra.mxu2 %v455_v27 }
  0x21   :  { %272 = vmatpush.bf16.msra.mxu1 %v454_v28 }
  0x22   :  { %469 = vmatpush.bf16.msra.mxu2 %v454_v28 }
  0x86   :  { %v94_v5 = vpop.f32.mrf.mxu0 }
  0x87   :  { %v123_v6 = vadd.f32 %v473_v4, %v94_v5 }
  0x89   :  { %v593_v7 = vmax.f32 %v123_v6, 0.0 }
  0x8b   :  { %v131_v8 = vmul.f32 %v593_v7, %v593_v7 }
  0x8d   :  { %135 = vadd.xlane.f32.xlu1 %v131_v8 }
  0x8e   :  { %v96_v9 = vpop.f32.mrf.mxu0 }
  0x8f   :  { %v124_v10 = vadd.f32 %v473_v4, %v96_v9  ;;  %v474_v9 = vld [vmem:[%s704_s4] ss:$0 sm:$0xff] }
  0x91   :  { %v597_v11 = vmax.f32 %v124_v10, 0.0 }
  0x93   :  { %v132_v12 = vmul.f32 %v597_v11, %v597_v11 }
  0x95   :  { %137 = vadd.xlane.f32.xlu1 %v132_v12 }
  0x96   :  { %v99_v13 = vpop.f32.mrf.mxu0 }
  0x97   :  { %v125_v14 = vadd.f32 %v473_v4, %v99_v13 }
  0x99   :  { %v601_v15 = vmax.f32 %v125_v14, 0.0 }
  0x9b   :  { %v133_v16 = vmul.f32 %v601_v15, %v601_v15 }
  0x9d   :  { %139 = vadd.xlane.f32.xlu0 %v133_v16 }
  0x9e   :  { %v101_v17 = vpop.f32.mrf.mxu0 }
  0x9f   :  { %v126_v18 = vadd.f32 %v473_v4, %v101_v17 }
  0xa1   :  { %v605_v19 = vmax.f32 %v126_v18, 0.0 }
  0xa3   :  { %v134_v20 = vmul.f32 %v605_v19, %v605_v19 }
  0xa5   :  { %141 = vadd.xlane.f32.xlu0 %v134_v20 }
 0x100   :  { %v136_v29 = vpop.xlane.xlu1 %135 }
 0x101   :  { %v143_v30 = vmax.f32 %v136_v29, 1e-24 }
 0x103   :  { %475 = vrsqrt.f32 %v143_v30  ;;  %vm153_vm2 = vweird.f32 %v143_v30 }
 0x108   :  { %v138_v31 = vpop.xlane.xlu1 %137 }
 0x109   :  { %v476_v32 = vpop.eup %475  ;;  %v144_v33 = vmax.f32 %v138_v31, 1e-24 }
 0x10a   :  { %v148_v34 = vmul.f32 %v476_v32, %v143_v30  ;;  %vm154_vm1 = vweird.f32 %v476_v32 }
 0x10b   :  { %477 = vrsqrt.f32 %v144_v33  ;;  %vm155_vm3 = vmor %vm153_vm2, %vm154_vm1  ;;  %vm163_vm5 = vweird.f32 %v144_v33 }
 0x10c   :  { %v149_v35 = vmul.f32 %v476_v32, %v148_v34 }
 0x10e   :  { %v150_v36 = vmul.f32 0.5, %v149_v35 }
 0x110   :  { %v151_v37 = vsub.f32 1.5, %v150_v36  ;;  %v140_v38 = vpop.xlane.xlu0 %139 }
 0x111   :  { %v478_v39 = vpop.eup %477  ;;  %v145_v40 = vmax.f32 %v140_v38, 1e-24 }
 0x112   :  { %v158_v41 = vmul.f32 %v478_v39, %v144_v33  ;;  %v152_v42 = vmul.f32 %v476_v32, %v151_v37  ;;  %vm164_vm4 = vweird.f32 %v478_v39 }
 0x113   :  { %479 = vrsqrt.f32 %v145_v40  ;;  %vm165_vm6 = vmor %vm163_vm5, %vm164_vm4  ;;  %vm173_vm8 = vweird.f32 %v145_v40 }
 0x114   :  { %v159_v43 = vmul.f32 %v478_v39, %v158_v41  ;;  %v156_v44 = vsel %vm155_vm3, %v476_v32, %v152_v42 }
 0x115   :  { %v187_v45 = vmul.f32 %v156_v44, %v593_v7  ;;  %v284_v7 = vlaneseq }
 0x116   :  { %v160_v46 = vmul.f32 0.5, %v159_v43  ;;  %v339_v43 = vld [vmem:[%s706_s6] sm:$0xff] }
 0x117   :  { %191 = vst [vmem:[#allocation3] sm:$0xff] %v187_v45  ;;  %v285_v8 = vand.u32 127, %v284_v7 }
 0x118   :  { %v161_v47 = vsub.f32 1.5, %v160_v46  ;;  %v142_v48 = vpop.xlane.xlu0 %141 }
 0x119   :  { %v480_v49 = vpop.eup %479  ;;  %v146_v50 = vmax.f32 %v142_v48, 1e-24  ;;  %vm286_vm13 = vcmp.lt.s32.totalorder %v285_v8, 8 }
 0x11a   :  { %v168_v51 = vmul.f32 %v480_v49, %v145_v40  ;;  %v162_v52 = vmul.f32 %v478_v39, %v161_v47  ;;  %vm174_vm7 = vweird.f32 %v480_v49 }
 0x11b   :  { %481 = vrsqrt.f32 %v146_v50  ;;  %vm175_vm9 = vmor %vm173_vm8, %vm174_vm7  ;;  %vm183_vm11 = vweird.f32 %v146_v50 }
 0x11c   :  { %v169_v53 = vmul.f32 %v480_v49, %v168_v51  ;;  %v166_v54 = vsel %vm165_vm6, %v478_v39, %v162_v52 }
 0x11d   :  { %v188_v55 = vmul.f32 %v166_v54, %v597_v11 }
 0x11e   :  { %v170_v56 = vmul.f32 0.5, %v169_v53 }
 0x11f   :  { %192 = vst [vmem:[#allocation3 + $0x8] sm:$0xff] %v188_v55  ;;  %v195_v57 = vpack.c.bf16 %v188_v55, %v187_v45 }
 0x120   :  { %v171_v58 = vsub.f32 1.5, %v170_v56 }
 0x121   :  { %v482_v59 = vpop.eup %481  ;;  %273 = vmatmul.bf16.vlgmr.msra.gmra.mxu1 %v195_v57  ;;  %v341_v57 = vld [vmem:[%s706_s6 + $0x10] sm:$0xff] }
 0x122   :  { %v178_v60 = vmul.f32 %v482_v59, %v146_v50  ;;  %v172_v61 = vmul.f32 %v480_v49, %v171_v58  ;;  %vm184_vm10 = vweird.f32 %v482_v59 }
 0x123   :  { %vm185_vm12 = vmor %vm183_vm11, %vm184_vm10 }
 0x124   :  { %v179_v62 = vmul.f32 %v482_v59, %v178_v60  ;;  %v176_v63 = vsel %vm175_vm9, %v480_v49, %v172_v61  ;;  %v340_v49 = vld [vmem:[%s706_s6 + $0x8] sm:$0xff] }
 0x125   :  { %v189_v0 = vmul.f32 %v176_v63, %v601_v15  ;;  %v342_v63 = vld [vmem:[%s706_s6 + $0x18] sm:$0xff] }
 0x126   :  { %v180_v1 = vmul.f32 0.5, %v179_v62 }
 0x127   :  { %193 = vst [vmem:[#allocation3 + $0x10] sm:$0xff] %v189_v0 }
 0x128   :  { %v181_v2 = vsub.f32 1.5, %v180_v1 }
 0x12a   :  { %v182_v3 = vmul.f32 %v482_v59, %v181_v2  ;;  %v359_v2 = vld [vmem:[%s705_s5] sm:$0xff] }
 0x12c   :  { %v186_v4 = vsel %vm185_vm12, %v482_v59, %v182_v3 }
 0x12d   :  { %v190_v5 = vmul.f32 %v186_v4, %v605_v19 }
 0x12f   :  { %194 = vst [vmem:[#allocation3 + $0x18] sm:$0xff] %v190_v5  ;;  %v196_v6 = vpack.c.bf16 %v190_v5, %v189_v0 }
 0x130   :  { %386 = dma.vmem_to_hbm [thread:$0]  %s379_s21, 512, %s381_s24, [#allocation4], %s526_s25, %s526_s25, %s527_s26  }
 0x131   :  { %278 = vmatmul.bf16.vlgmr.msra.gmra.mxu2 %v196_v6  ;;  %v360_v6 = vld [vmem:[%s705_s5 + $0x8] sm:$0xff] }
 0x19e   :  { %v274_v10 = vpop.f32.mrf.mxu1 }
 0x19f   :  { %v275_v11 = vadd.f32 %v474_v9, %v274_v10  ;;  %v361_v10 = vld [vmem:[%s705_s5 + $0x10] sm:$0xff] }
 0x1a1   :  { %v287_v12 = vsel %vm286_vm13, %v275_v11, -1e+30 }
 0x1a2   :  { %291 = vmax.xlane.f32.xlu2 %v287_v12 }
 0x1a6   :  { %v276_v13 = vpop.f32.mrf.mxu1 }
 0x1a7   :  { %v277_v14 = vadd.f32 %v474_v9, %v276_v13 }
 0x1a9   :  { %v288_v15 = vsel %vm286_vm13, %v277_v14, -1e+30  ;;  %v362_v14 = vld [vmem:[%s705_s5 + $0x18] sm:$0xff] }
 0x1aa   :  { %293 = vmax.xlane.f32.xlu2 %v288_v15 }
 0x1b4   :  { %v279_v16 = vpop.f32.mrf.mxu2 }
 0x1b5   :  { %v280_v17 = vadd.f32 %v474_v9, %v279_v16 }
 0x1b7   :  { %v289_v18 = vsel %vm286_vm13, %v280_v17, -1e+30 }
 0x1b8   :  { %295 = vmax.xlane.f32.xlu0 %v289_v18 }
 0x1bc   :  { %v281_v19 = vpop.f32.mrf.mxu2 }
 0x1bd   :  { %v282_v20 = vadd.f32 %v474_v9, %v281_v19 }
 0x1bf   :  { %v640_v21 = vsel %vm286_vm13, %v282_v20, -1e+30 }
 0x1c0   :  { %297 = vmax.xlane.f32.xlu1 %v640_v21 }
 0x215   :  { %v292_v22 = vpop.xlane.xlu2 %291 }
 0x216   :  { %v299_v23 = vsub.f32 %v287_v12, %v292_v22 }
 0x218   :  { %v303_v24 = vmul.f32 1.442695, %v299_v23 }
 0x21a   :  { %483 = vpow2.f32 %v303_v24 }
 0x21d   :  { %v294_v25 = vpop.xlane.xlu2 %293 }
 0x21e   :  { %v300_v26 = vsub.f32 %v288_v15, %v294_v25 }
 0x220   :  { %v484_v27 = vpop.eup %483  ;;  %v305_v28 = vmul.f32 1.442695, %v300_v26 }
 0x221   :  { %311 = vadd.xlane.f32.xlu2 %v484_v27 }
 0x222   :  { %485 = vpow2.f32 %v305_v28 }
 0x228   :  { %v486_v29 = vpop.eup %485 }
 0x229   :  { %313 = vadd.xlane.f32.xlu0 %v486_v29 }
 0x22b   :  { %v296_v30 = vpop.xlane.xlu0 %295 }
 0x22c   :  { %v301_v31 = vsub.f32 %v289_v18, %v296_v30 }
 0x22e   :  { %v307_v32 = vmul.f32 1.442695, %v301_v31 }
 0x230   :  { %487 = vpow2.f32 %v307_v32 }
 0x233   :  { %v298_v33 = vpop.xlane.xlu1 %297 }
 0x234   :  { %v302_v34 = vsub.f32 %v640_v21, %v298_v33 }
 0x236   :  { %v488_v35 = vpop.eup %487  ;;  %v309_v36 = vmul.f32 1.442695, %v302_v34 }
 0x237   :  { %315 = vadd.xlane.f32.xlu1 %v488_v35 }
 0x238   :  { %489 = vpow2.f32 %v309_v36 }
 0x23e   :  { %v490_v37 = vpop.eup %489 }
 0x23f   :  { %317 = vadd.xlane.f32.xlu2 %v490_v37 }
 0x294   :  { %v312_v38 = vpop.xlane.xlu2 %311 }
 0x295   :  { %491 = vlog2.f32 %v312_v38 }
 0x29b   :  { %v492_v39 = vpop.eup %491 }
 0x29c   :  { %v320_v40 = vmul.f32 0.6931472, %v492_v39  ;;  %v314_v41 = vpop.xlane.xlu0 %313 }
 0x29d   :  { %493 = vlog2.f32 %v314_v41 }
 0x29e   :  { %v327_v42 = vadd.f32 %v320_v40, %v292_v22 }
 0x2a0   :  { %v331_v44 = vsub.f32 %v287_v12, %v327_v42 }
 0x2a2   :  { %335 = vst [vmem:[%s707_s7] sm:$0xff] %v331_v44  ;;  %v343_v45 = vmul.f32 %v339_v43, %v331_v44 }
 0x2a3   :  { %v494_v46 = vpop.eup %493 }
 0x2a4   :  { %v322_v47 = vmul.f32 0.6931472, %v494_v46  ;;  %347 = vadd.xlane.f32.xlu0 %v343_v45 }
 0x2a6   :  { %v328_v48 = vadd.f32 %v322_v47, %v294_v25 }
 0x2a8   :  { %v332_v50 = vsub.f32 %v288_v15, %v328_v48 }
 0x2aa   :  { %v316_v51 = vpop.xlane.xlu1 %315  ;;  %v344_v52 = vmul.f32 %v340_v49, %v332_v50  ;;  %336 = vst [vmem:[%s707_s7 + $0x8] sm:$0xff] %v332_v50 }
 0x2ab   :  { %495 = vlog2.f32 %v316_v51 }
 0x2ac   :  { %349 = vadd.xlane.f32.xlu1 %v344_v52 }
 0x2b1   :  { %v496_v53 = vpop.eup %495 }
 0x2b2   :  { %v324_v54 = vmul.f32 0.6931472, %v496_v53  ;;  %v318_v55 = vpop.xlane.xlu2 %317 }
 0x2b3   :  { %497 = vlog2.f32 %v318_v55 }
 0x2b4   :  { %v329_v56 = vadd.f32 %v324_v54, %v296_v30 }
 0x2b6   :  { %v333_v58 = vsub.f32 %v289_v18, %v329_v56 }
 0x2b8   :  { %v345_v59 = vmul.f32 %v341_v57, %v333_v58  ;;  %337 = vst [vmem:[%s707_s7 + $0x10] sm:$0xff] %v333_v58 }
 0x2b9   :  { %v498_v60 = vpop.eup %497 }
 0x2ba   :  { %v326_v61 = vmul.f32 0.6931472, %v498_v60  ;;  %351 = vadd.xlane.f32.xlu2 %v345_v59 }
 0x2bc   :  { %v330_v62 = vadd.f32 %v326_v61, %v298_v33 }
 0x2be   :  { %v334_v0 = vsub.f32 %v640_v21, %v330_v62 }
 0x2c0   :  { %338 = vst [vmem:[%s707_s7 + $0x18] sm:$0xff] %v334_v0  ;;  %v346_v1 = vmul.f32 %v342_v63, %v334_v0 }
 0x2c2   :  { %353 = vadd.xlane.f32.xlu0 %v346_v1 }
 0x317   :  { %v348_v3 = vpop.xlane.xlu0 %347 }
 0x318   :  { %v355_v4 = vsub.f32 0.0, %v348_v3 }
 0x31a   :  { %v363_v5 = vmul.f32 %v359_v2, %v355_v4 }
 0x31c   :  { %368 = vst.msk [vmem:[%s709_s9] sm:$0xff] %vm367_vm14, %v363_v5 }
 0x31f   :  { %v350_v7 = vpop.xlane.xlu1 %349 }
 0x320   :  { %v356_v8 = vsub.f32 0.0, %v350_v7 }
 0x322   :  { %v364_v9 = vmul.f32 %v360_v6, %v356_v8 }
 0x324   :  { %369 = vst.msk [vmem:[%s709_s9 + $0x8] sm:$0xff] %vm367_vm14, %v364_v9 }
 0x32d   :  { %v352_v11 = vpop.xlane.xlu2 %351 }
 0x32e   :  { %v357_v12 = vsub.f32 0.0, %v352_v11 }
 0x330   :  { %v365_v13 = vmul.f32 %v361_v10, %v357_v12 }
 0x332   :  { %370 = vst.msk [vmem:[%s709_s9 + $0x10] sm:$0xff] %vm367_vm14, %v365_v13 }
 0x335   :  { %v354_v15 = vpop.xlane.xlu0 %353 }
 0x336   :  { %v358_v16 = vsub.f32 0.0, %v354_v15 }
 0x338   :  { %v366_v17 = vmul.f32 %v362_v14, %v358_v16 }
 0x33a   :  { %371 = vst.msk [vmem:[%s709_s9 + $0x18] sm:$0xff] %vm367_vm14, %v366_v17 }
 0x33b   :  { %523 = dma.done.wait [#allocation4], 512  }
 0x33c   :  { %524 = vsyncadd [#allocation4], 4294966784 }
 0x33d   :  { %397 = vsyncpa [#allocation4], 1 }

</bundles_post_ra>
